<compile_context>
chip_gen: v7x
topology: tpu7x:2x2x1
jax: 0.10.0
libtpu: 0.0.40
codegen_flags: <defaults>
</compile_context>

<pallas_src>
import functools

import jax
import jax.numpy as jnp
from jax import lax
from jax.experimental import pallas as pl
from jax.experimental.pallas import tpu as pltpu

VMEM = pltpu.MemorySpace.VMEM
SMEM = pltpu.MemorySpace.SMEM


def _round_up(x, m):
    return ((x + m - 1) // m) * m


# ---------------------------------------------------------------------------
# Tiled matmul kernels (used by every 1x1 conv)
# ---------------------------------------------------------------------------
def _matmul_kernel(x_ref, w_ref, o_ref, acc_ref):
    @pl.when(pl.program_id(2) == 0)
    def _():
        acc_ref[...] = jnp.zeros_like(acc_ref)

    acc_ref[...] += jnp.dot(x_ref[...], w_ref[...],
                            preferred_element_type=jnp.float32)

    @pl.when(pl.program_id(2) == pl.num_programs(2) - 1)
    def _():
        o_ref[...] = acc_ref[...]


def _matmul_bias_kernel(x_ref, w_ref, b_ref, o_ref, acc_ref):
    @pl.when(pl.program_id(2) == 0)
    def _():
        acc_ref[...] = jnp.zeros_like(acc_ref)

    acc_ref[...] += jnp.dot(x_ref[...], w_ref[...],
                            preferred_element_type=jnp.float32)

    @pl.when(pl.program_id(2) == pl.num_programs(2) - 1)
    def _():
        o_ref[...] = acc_ref[...] + b_ref[...]


def pallas_matmul(x, w, b=None, tm=256, tn=256, tk=512):
    """x: (M, K) f32, w: (K, N) f32, b: (N,) or None -> (M, N) f32.

    Tiled over (M//tm, N//tn, K//tk) with an f32 VMEM accumulator; operands
    are cast to bf16 (MXU), accumulation stays f32.
    """
    M, K = x.shape
    N = w.shape[1]
    tm = min(tm, _round_up(M, 8))
    tn = min(tn, _round_up(N, 128))
    tk = min(tk, _round_up(K, 128))
    Mp, Np, Kp = _round_up(M, tm), _round_up(N, tn), _round_up(K, tk)

    xp = jnp.pad(x, ((0, Mp - M), (0, Kp - K))).astype(jnp.bfloat16)
    wp = jnp.pad(w, ((0, Kp - K), (0, Np - N))).astype(jnp.bfloat16)

    grid = (Mp // tm, Np // tn, Kp // tk)
    x_spec = pl.BlockSpec((tm, tk), lambda i, j, k: (i, k))
    w_spec = pl.BlockSpec((tk, tn), lambda i, j, k: (k, j))
    o_spec = pl.BlockSpec((tm, tn), lambda i, j, k: (i, j))
    cparams = pltpu.CompilerParams(
        dimension_semantics=("parallel", "parallel", "arbitrary"))
    scratch = [pltpu.VMEM((tm, tn), jnp.float32)]

    if b is None:
        y = pl.pallas_call(
            _matmul_kernel,
            grid=grid,
            in_specs=[x_spec, w_spec],
            out_specs=o_spec,
            out_shape=jax.ShapeDtypeStruct((Mp, Np), jnp.float32),
            scratch_shapes=scratch,
            compiler_params=cparams,
        )(xp, wp)
    else:
        bp = jnp.pad(b.reshape(1, N).astype(jnp.float32), ((0, 0), (0, Np - N)))
        b_spec = pl.BlockSpec((1, tn), lambda i, j, k: (0, j))
        y = pl.pallas_call(
            _matmul_bias_kernel,
            grid=grid,
            in_specs=[x_spec, w_spec, b_spec],
            out_specs=o_spec,
            out_shape=jax.ShapeDtypeStruct((Mp, Np), jnp.float32),
            scratch_shapes=scratch,
            compiler_params=cparams,
        )(xp, wp, bp)
    return y[:M, :N]


# ---------------------------------------------------------------------------
# Row-wise normalization kernel (LayerNorm WithBias / GroupNorm)
# ---------------------------------------------------------------------------
def _rownorm_kernel(x_ref, g_ref, b_ref, o_ref, *, eps):
    x = x_ref[...]
    mu = jnp.mean(x, axis=-1, keepdims=True)
    xc = x - mu
    var = jnp.mean(xc * xc, axis=-1, keepdims=True)
    o_ref[...] = xc * lax.rsqrt(var + eps) * g_ref[...] + b_ref[...]


def layer_norm_withbias(x, weight, bias):
    """Restormer WithBias LayerNorm over the channel dim of an NHWC tensor."""
    B, H, W, C = x.shape
    M = B * H * W
    tr = min(256, _round_up(M, 8))
    Mp = _round_up(M, tr)
    xm = jnp.pad(x.reshape(M, C), ((0, Mp - M), (0, 0)))
    y = pl.pallas_call(
        functools.partial(_rownorm_kernel, eps=1e-5),
        grid=(Mp // tr,),
        in_specs=[pl.BlockSpec((tr, C), lambda i: (i, 0)),
                  pl.BlockSpec((1, C), lambda i: (0, 0)),
                  pl.BlockSpec((1, C), lambda i: (0, 0))],
        out_specs=pl.BlockSpec((tr, C), lambda i: (i, 0)),
        out_shape=jax.ShapeDtypeStruct((Mp, C), jnp.float32),
        compiler_params=pltpu.CompilerParams(dimension_semantics=("parallel",)),
    )(xm, weight.reshape(1, C), bias.reshape(1, C))
    return y[:M].reshape(B, H, W, C)


def group_norm(x, gamma, beta, groups=16, eps=1e-6):
    """torch.nn.GroupNorm(16, C, eps=1e-6, affine=True) on an NHWC tensor."""
    B, H, W, C = x.shape
    cg = C // groups
    hw = H * W
    L = cg * hw
    # (B, HW, G, cg) -> (B, G, cg, HW) -> (B*G, 1, L)
    xg = x.reshape(B, hw, groups, cg)
    xg = jnp.transpose(xg, (0, 2, 3, 1)).reshape(B * groups, 1, L)
    gam = jnp.broadcast_to(gamma.reshape(groups, cg, 1),
                           (groups, cg, hw)).reshape(groups, 1, L)
    bet = jnp.broadcast_to(beta.reshape(groups, cg, 1),
                           (groups, cg, hw)).reshape(groups, 1, L)
    y = pl.pallas_call(
        functools.partial(_rownorm_kernel, eps=eps),
        grid=(B, groups),
        in_specs=[pl.BlockSpec((1, 1, L), lambda b, g: (b * groups + g, 0, 0)),
                  pl.BlockSpec((1, 1, L), lambda b, g: (g, 0, 0)),
                  pl.BlockSpec((1, 1, L), lambda b, g: (g, 0, 0))],
        out_specs=pl.BlockSpec((1, 1, L), lambda b, g: (b * groups + g, 0, 0)),
        out_shape=jax.ShapeDtypeStruct((B * groups, 1, L), jnp.float32),
        compiler_params=pltpu.CompilerParams(
            dimension_semantics=("parallel", "parallel")),
    )(xg, gam, bet)
    y = y.reshape(B, groups, cg, hw)
    return jnp.transpose(y, (0, 3, 1, 2)).reshape(B, H, W, C)


# ---------------------------------------------------------------------------
# Gated GELU (lane-dense elementwise kernel)
# ---------------------------------------------------------------------------
_SQRT_2_OVER_PI = 0.7978845608028654


def _gelu_gate_kernel(x1_ref, x2_ref, o_ref):
    x = x1_ref[...]
    # tanh-approximate GELU (tanh lowers to the EUP slot).
    # TODO(synk): torch F.gelu defaults to exact erf; approximation error ~1e-3.
    inner = _SQRT_2_OVER_PI * (x + 0.044715 * x * x * x)
    g = 0.5 * x * (1.0 + jnp.tanh(inner))
    o_ref[...] = g * x2_ref[...]


def pallas_gelu_gate(x1, x2):
    """Elementwise F.gelu(x1) * x2 on same-shape tensors (lane-dense layout)."""
    shape = x1.shape
    n = x1.size
    L = 512
    tr = 64
    rows = _round_up(pl.cdiv(n, L), tr)
    pad = rows * L - n
    a = jnp.pad(x1.reshape(-1), (0, pad)).reshape(rows, L)
    b = jnp.pad(x2.reshape(-1), (0, pad)).reshape(rows, L)
    y = pl.pallas_call(
        _gelu_gate_kernel,
        grid=(rows // tr,),
        in_specs=[pl.BlockSpec((tr, L), lambda i: (i, 0))] * 2,
        out_specs=pl.BlockSpec((tr, L), lambda i: (i, 0)),
        out_shape=jax.ShapeDtypeStruct((rows, L), jnp.float32),
        compiler_params=pltpu.CompilerParams(dimension_semantics=("parallel",)),
    )(a, b)
    return y.reshape(-1)[:n].reshape(shape)


# ---------------------------------------------------------------------------
# Depthwise 3x3 conv (NHWC, gridded over batch x channel tiles)
# ---------------------------------------------------------------------------
def _dwconv3x3_kernel(x_ref, w_ref, o_ref):
    H, W = o_ref.shape[1], o_ref.shape[2]
    x = x_ref[0]                                   # (H+2, W+2, ct)
    acc = x[0:H, 0:W, :] * w_ref[0]
    for k in range(1, 9):
        dy, dx = k // 3, k % 3
        acc = acc + x[dy:dy + H, dx:dx + W, :] * w_ref[k]
    o_ref[0] = acc


def dwconv3x3(x, w):
    """Depthwise 3x3, stride 1, pad 1.  x: NHWC, w: (C, 1, 3, 3) torch layout."""
    B, H, W, C = x.shape
    ct = C if C <= 256 else 256
    Cp = _round_up(C, ct)
    xp = jnp.pad(x, ((0, 0), (1, 1), (1, 1), (0, Cp - C)))
    wk = jnp.transpose(w.reshape(C, 9), (1, 0))                 # (9, C)
    wk = jnp.pad(wk, ((0, 0), (0, Cp - C))).reshape(9, 1, 1, Cp)
    out = pl.pallas_call(
        _dwconv3x3_kernel,
        grid=(B, Cp // ct),
        in_specs=[pl.BlockSpec((1, H + 2, W + 2, ct), lambda b, c: (b, 0, 0, c)),
                  pl.BlockSpec((9, 1, 1, ct), lambda b, c: (0, 0, 0, c))],
        out_specs=pl.BlockSpec((1, H, W, ct), lambda b, c: (b, 0, 0, c)),
        out_shape=jax.ShapeDtypeStruct((B, H, W, Cp), jnp.float32),
        compiler_params=pltpu.CompilerParams(
            dimension_semantics=("parallel", "parallel")),
    )(xp, wk)
    return out[..., :C]


# ---------------------------------------------------------------------------
# Standard 3x3 conv, fused (no im2col materialization)
# ---------------------------------------------------------------------------
def _conv3x3_kernel(x_ref, w_ref, o_ref):
    H, W, Cout = o_ref.shape[1], o_ref.shape[2], o_ref.shape[3]
    Cin = x_ref.shape[3]
    x = x_ref[0]                                   # (H+2, W+2, Cin) f32
    acc = jnp.zeros((H * W, Cout), jnp.float32)
    for k in range(9):
        dy, dx = k // 3, k % 3
        win = x[dy:dy + H, dx:dx + W, :].reshape(H * W, Cin).astype(jnp.bfloat16)
        acc = acc + jnp.dot(win, w_ref[k], preferred_element_type=jnp.float32)
    o_ref[0] = acc.reshape(H, W, Cout)


def conv3x3(x, w):
    """3x3 conv, stride 1, pad 1, no bias.  x: NHWC, w: (Cout, Cin, 3, 3)."""
    B, H, W, Cin = x.shape
    Cout = w.shape[0]
    xp = jnp.pad(x, ((0, 0), (1, 1), (1, 1), (0, 0)))
    wk = jnp.transpose(w, (2, 3, 1, 0)).reshape(9, Cin, Cout).astype(jnp.bfloat16)
    return pl.pallas_call(
        _conv3x3_kernel,
        grid=(B,),
        in_specs=[pl.BlockSpec((1, H + 2, W + 2, Cin), lambda b: (b, 0, 0, 0)),
                  pl.BlockSpec((9, Cin, Cout), lambda b: (0, 0, 0))],
        out_specs=pl.BlockSpec((1, H, W, Cout), lambda b: (b, 0, 0, 0)),
        out_shape=jax.ShapeDtypeStruct((B, H, W, Cout), jnp.float32),
        compiler_params=pltpu.CompilerParams(dimension_semantics=("parallel",)),
    )(xp, wk)


# ---------------------------------------------------------------------------
# Channel (Restormer) attention — channels-last, grid (B, heads)
# ---------------------------------------------------------------------------
def _chan_attn_kernel(t_ref, q_ref, k_ref, v_ref, o_ref):
    h = pl.program_id(1)
    q = q_ref[0]                                   # (hw, ch)
    k = k_ref[0]
    v = v_ref[0]
    t = t_ref[h, 0]
    # F.normalize along hw (axis 0); clamp_min(1e-12) on the norm.
    qn = q * lax.rsqrt(jnp.maximum(jnp.sum(q * q, axis=0, keepdims=True), 1e-24))
    kn = k * lax.rsqrt(jnp.maximum(jnp.sum(k * k, axis=0, keepdims=True), 1e-24))
    # attn[i, j] = sum_hw qn[hw, i] * kn[hw, j]
    attn = lax.dot_general(qn.astype(jnp.bfloat16), kn.astype(jnp.bfloat16),
                           (((0,), (0,)), ((), ())),
                           preferred_element_type=jnp.float32) * t
    attn = attn - jnp.max(attn, axis=-1, keepdims=True)
    e = jnp.exp(attn)
    p = e * pl.reciprocal(jnp.sum(e, axis=-1, keepdims=True), approx=True)
    # out[hw, i] = sum_j p[i, j] * v[hw, j]
    o_ref[0] = lax.dot_general(v.astype(jnp.bfloat16), p.astype(jnp.bfloat16),
                               (((1,), (1,)), ((), ())),
                               preferred_element_type=jnp.float32)


def channel_attention(qkv, temperature, num_heads):
    """qkv: NHWC (B, H, W, 3C) with channel order [q | k | v]."""
    B, H, W, C3 = qkv.shape
    C = C3 // 3
    ch = C // num_heads
    hw = H * W

    def split_heads(t):                            # (B, hw, C) -> (B*heads, hw, ch)
        t = t.reshape(B, hw, num_heads, ch)
        return jnp.transpose(t, (0, 2, 1, 3)).reshape(B * num_heads, hw, ch)

    flat = qkv.reshape(B, hw, 3 * C)
    q = split_heads(flat[..., :C])
    k = split_heads(flat[..., C:2 * C])
    v = split_heads(flat[..., 2 * C:])
    temp = temperature.reshape(num_heads, 1).astype(jnp.float32)

    blk = lambda b, h: (b * num_heads + h, 0, 0)
    out = pl.pallas_call(
        _chan_attn_kernel,
        grid=(B, num_heads),
        in_specs=[pl.BlockSpec(memory_space=SMEM),
                  pl.BlockSpec((1, hw, ch), blk),
                  pl.BlockSpec((1, hw, ch), blk),
                  pl.BlockSpec((1, hw, ch), blk)],
        out_specs=pl.BlockSpec((1, hw, ch), blk),
        out_shape=jax.ShapeDtypeStruct((B * num_heads, hw, ch), jnp.float32),
        compiler_params=pltpu.CompilerParams(
            dimension_semantics=("parallel", "parallel")),
    )(temp, q, k, v)
    out = out.reshape(B, num_heads, hw, ch)
    out = jnp.transpose(out, (0, 2, 1, 3)).reshape(B, H, W, C)
    return out


# ---------------------------------------------------------------------------
# Spatial cross attention (cross_AttnBlock core) — channels-last
# ---------------------------------------------------------------------------
def _spatial_attn_kernel(q_ref, k_ref, v_ref, o_ref, *, scale):
    q = q_ref[0]                                   # (hw, c)
    k = k_ref[0]
    v = v_ref[0]
    # w[i, j] = sum_c q[i, c] * k[j, c]
    w = lax.dot_general(q.astype(jnp.bfloat16), k.astype(jnp.bfloat16),
                        (((1,), (1,)), ((), ())),
                        preferred_element_type=jnp.float32) * scale
    w = w - jnp.max(w, axis=-1, keepdims=True)
    e = jnp.exp(w)
    p = e * pl.reciprocal(jnp.sum(e, axis=-1, keepdims=True), approx=True)
    # out[i, c] = sum_j p[i, j] * v[j, c]
    o_ref[0] = jnp.dot(p.astype(jnp.bfloat16), v.astype(jnp.bfloat16),
                       preferred_element_type=jnp.float32)
    # TODO(synk): flash-style online-softmax tiling over j for large H*W.


def spatial_attention(q, k, v):
    B, H, W, C = q.shape
    hw = H * W
    scale = float(int(C) ** (-0.5))
    out = pl.pallas_call(
        functools.partial(_spatial_attn_kernel, scale=scale),
        grid=(B,),
        in_specs=[pl.BlockSpec((1, hw, C), lambda b: (b, 0, 0))] * 3,
        out_specs=pl.BlockSpec((1, hw, C), lambda b: (b, 0, 0)),
        out_shape=jax.ShapeDtypeStruct((B, hw, C), jnp.float32),
        compiler_params=pltpu.CompilerParams(dimension_semantics=("parallel",)),
    )(q.reshape(B, hw, C), k.reshape(B, hw, C), v.reshape(B, hw, C))
    return out.reshape(B, H, W, C)


# ---------------------------------------------------------------------------
# Thin NHWC glue around the kernels
# ---------------------------------------------------------------------------
def conv1x1(x, w, b=None):
    """1x1 conv.  x: NHWC, w: (Cout, Cin) torch layout, b: (Cout,) or None."""
    B, H, W, C = x.shape
    Cout = w.shape[0]
    y = pallas_matmul(x.reshape(B * H * W, C), jnp.transpose(w), b)
    return y.reshape(B, H, W, Cout)


def upsample2(x):
    """nn.Upsample(scale_factor=2, mode='nearest') on NHWC."""
    return jnp.repeat(jnp.repeat(x, 2, axis=1), 2, axis=2)


def to_nhwc(t):
    return jnp.transpose(t, (0, 2, 3, 1))


def to_nchw(t):
    return jnp.transpose(t, (0, 3, 1, 2))


# ---------------------------------------------------------------------------
# Module forwards (all NHWC internally)
# ---------------------------------------------------------------------------
def attention_block(x, p, num_heads):
    qkv = conv1x1(x, p["qkv_w"])
    qkv = dwconv3x3(qkv, p["qkv_dw_w"])
    out = channel_attention(qkv, p["temperature"], num_heads)
    return conv1x1(out, p["proj_w"])


def feed_forward(x, p):
    hidden = p["proj_out_w"].shape[1]
    h = conv1x1(x, p["proj_in_w"])
    h = dwconv3x3(h, p["dw_w"])
    x1, x2 = h[..., :hidden], h[..., hidden:]
    g = pallas_gelu_gate(x1, x2)
    return conv1x1(g, p["proj_out_w"])


def transformer_block(x, p, num_heads):
    x = x + attention_block(layer_norm_withbias(x, p["n1_w"], p["n1_b"]),
                            p["attn"], num_heads)
    x = x + feed_forward(layer_norm_withbias(x, p["n2_w"], p["n2_b"]), p["ffn"])
    return x


def cross_attn_block(xy, p):
    C = xy.shape[-1] // 2
    x, y = xy[..., :C], xy[..., C:]
    h_ = group_norm(x, p["gn_w"], p["gn_b"])
    yn = group_norm(y, p["gn_w"], p["gn_b"])     # same norm module applied to both
    q = conv1x1(yn, p["q_w"], p["q_b"])
    k = conv1x1(h_, p["k_w"], p["k_b"])
    v = conv1x1(h_, p["v_w"], p["v_b"])
    h_ = spatial_attention(q, k, v)
    h_ = conv1x1(h_, p["proj_w"], p["proj_b"])
    return x + h_


def image_fusion_block_forward(params, data_dict):
    # One NCHW -> NHWC transpose per input at entry; one NHWC -> NCHW at exit.
    y = to_nhwc(data_dict["skip_feat4"])
    skip3 = to_nhwc(data_dict["skip_feat3"])
    skip2 = to_nhwc(data_dict["skip_feat2"])
    skip1 = to_nhwc(data_dict["skip_feat1"])
    sf = [to_nhwc(t) for t in data_dict["skip_feature"]]

    for bp in params["latent"]:
        y = transformer_block(y, bp, num_heads=4)
    y_recon4 = y

    y = upsample2(y_recon4)
    y = jnp.concatenate([y, skip3], axis=-1)
    y = conv1x1(y, params["reduce3_w"])
    for bp in params["dec3"]:
        y = transformer_block(y, bp, num_heads=2)
    y_recon3 = y

    y = upsample2(y_recon3)
    y = jnp.concatenate([y, skip2], axis=-1)
    y = conv1x1(y, params["reduce2_w"])
    for bp in params["dec2"]:
        y = transformer_block(y, bp, num_heads=2)
    y_recon2 = y

    y = upsample2(y_recon2)
    y = jnp.concatenate([y, skip1], axis=-1)
    y = conv1x1(y, params["reduce1_w"])
    for bp in params["dec1"]:
        y = transformer_block(y, bp, num_heads=1)
    for bp in params["refine"]:
        y = transformer_block(y, bp, num_heads=1)
    y_recon1 = y

    recon_image = conv3x3(y_recon1, params["output_w"])

    img_f3 = cross_attn_block(jnp.concatenate([sf[3], y_recon4], axis=-1),
                              params["cab3"])
    img_f3 = upsample2(conv1x1(img_f3, params["fusion3conv_w"]))
    img_f2 = cross_attn_block(jnp.concatenate([sf[2], y_recon3], axis=-1),
                              params["cab2"])
    img_f2 = upsample2(conv1x1(jnp.concatenate([img_f2, img_f3], axis=-1),
                               params["fusion2conv_w"]))
    img_f1 = cross_attn_block(jnp.concatenate([sf[1], y_recon2], axis=-1),
                              params["cab1"])
    img_f1 = upsample2(conv1x1(jnp.concatenate([img_f1, img_f2], axis=-1),
                               params["fusion1conv_w"]))
    image_features = conv3x3(jnp.concatenate([img_f1, sf[0], y_recon1], axis=-1),
                             params["fusion1_w"])

    out = dict(data_dict)
    out["recon_image"] = to_nchw(recon_image)
    out["image_features"] = to_nchw(image_features)
    return out


# ---------------------------------------------------------------------------
# Deterministic parameter construction (shapes per the PyTorch __init__)
# ---------------------------------------------------------------------------
class KeyGen:
    def __init__(self, key):
        self._key = key

    def __call__(self):
        self._key, sub = jax.random.split(self._key)
        return sub


def _w(kg, shape, scale=0.05):
    return jax.random.normal(kg(), shape, jnp.float32) * scale


def make_tb_params(kg, dim, heads):
    hidden = int(dim * 2.66)
    return {
        "n1_w": jnp.ones((dim,), jnp.float32),
        "n1_b": jnp.zeros((dim,), jnp.float32),
        "n2_w": jnp.ones((dim,), jnp.float32),
        "n2_b": jnp.zeros((dim,), jnp.float32),
        "attn": {
            "temperature": jnp.ones((heads, 1, 1), jnp.float32),
            "qkv_w": _w(kg, (dim * 3, dim)),
            "qkv_dw_w": _w(kg, (dim * 3, 1, 3, 3), 0.1),
            "proj_w": _w(kg, (dim, dim)),
        },
        "ffn": {
            "proj_in_w": _w(kg, (hidden * 2, dim)),
            "dw_w": _w(kg, (hidden * 2, 1, 3, 3), 0.1),
            "proj_out_w": _w(kg, (dim, hidden)),
        },
    }


def make_cab_params(kg, c1):
    ch = c1 // 2
    return {
        "gn_w": jnp.ones((ch,), jnp.float32),
        "gn_b": jnp.zeros((ch,), jnp.float32),
        "q_w": _w(kg, (ch, ch)), "q_b": _w(kg, (ch,), 0.01),
        "k_w": _w(kg, (ch, ch)), "k_b": _w(kg, (ch,), 0.01),
        "v_w": _w(kg, (ch, ch)), "v_b": _w(kg, (ch,), 0.01),
        "proj_w": _w(kg, (ch, ch)), "proj_b": _w(kg, (ch,), 0.01),
    }


def make_params(key):
    kg = KeyGen(key)
    return {
        "latent": [make_tb_params(kg, 512, 4) for _ in range(4)],
        "reduce3_w": _w(kg, (256, 768)),
        "dec3": [make_tb_params(kg, 256, 2) for _ in range(4)],
        "reduce2_w": _w(kg, (128, 384)),
        "dec2": [make_tb_params(kg, 128, 2) for _ in range(4)],
        "reduce1_w": _w(kg, (64, 192)),
        "dec1": [make_tb_params(kg, 64, 1) for _ in range(2)],
        "refine": [make_tb_params(kg, 64, 1) for _ in range(2)],
        "output_w": _w(kg, (3, 64, 3, 3)),
        "cab3": make_cab_params(kg, 1024),
        "cab2": make_cab_params(kg, 512),
        "cab1": make_cab_params(kg, 256),
        "fusion3conv_w": _w(kg, (256, 512)),
        "fusion2conv_w": _w(kg, (256, 512)),
        "fusion1conv_w": _w(kg, (128, 384)),
        "fusion1_w": _w(kg, (64, 256, 3, 3)),
    }


if __name__ == "__main__":
    root = jax.random.PRNGKey(0)
    pkey, dkey = jax.random.split(root)
    params = make_params(pkey)

    # Channel widths are fixed by the module (512/256/128/64); keep spatial small.
    B, h4, w4 = 2, 2, 2
    dk = KeyGen(dkey)
    data = {
        "skip_feat4": jax.random.normal(dk(), (B, 512, h4, w4), jnp.float32),
        "skip_feat3": jax.random.normal(dk(), (B, 256, 2 * h4, 2 * w4), jnp.float32),
        "skip_feat2": jax.random.normal(dk(), (B, 128, 4 * h4, 4 * w4), jnp.float32),
        "skip_feat1": jax.random.normal(dk(), (B, 64, 8 * h4, 8 * w4), jnp.float32),
        "skip_feature": [
            jax.random.normal(dk(), (B, 64, 8 * h4, 8 * w4), jnp.float32),
            jax.random.normal(dk(), (B, 128, 4 * h4, 4 * w4), jnp.float32),
            jax.random.normal(dk(), (B, 256, 2 * h4, 2 * w4), jnp.float32),
            jax.random.normal(dk(), (B, 512, h4, w4), jnp.float32),
        ],
    }

    out = image_fusion_block_forward(params, data)
    jax.block_until_ready(out["recon_image"])
    jax.block_until_ready(out["image_features"])
    assert out["recon_image"].shape == (B, 3, 8 * h4, 8 * w4)
    assert out["image_features"].shape == (B, 64, 8 * h4, 8 * w4)
    assert bool(jnp.all(jnp.isfinite(out["recon_image"])))
    assert bool(jnp.all(jnp.isfinite(out["image_features"])))
    print("KERNEL_OK")
</pallas_src>

<mosaic_0001>
module attributes {stable_mosaic.version = 11 : i64} {
  func.func @_rownorm_kernel(%arg0: i32, %arg1: memref<8x512xf32, #tpu.memory_space<vmem>>, %arg2: memref<1x512xf32, #tpu.memory_space<vmem>>, %arg3: memref<1x512xf32, #tpu.memory_space<vmem>>, %arg4: memref<8x512xf32, #tpu.memory_space<vmem>>) attributes {dimension_semantics = [#tpu.dimension_semantics<parallel>], iteration_bounds = array<i64: 1>, scalar_prefetch = 0 : i64, scratch_operands = 0 : i64, tpu.core_type = #tpu.core_type<tc>, window_params = [{transform_indices = @transform_0, window_bounds = array<i64: 8, 512>}, {pipeline_mode = #tpu.pipeline_mode<synchronous>, transform_indices = @transform_1, window_bounds = array<i64: 1, 512>}, {pipeline_mode = #tpu.pipeline_mode<synchronous>, transform_indices = @transform_2, window_bounds = array<i64: 1, 512>}, {transform_indices = @transform_3, window_bounds = array<i64: 8, 512>}]} {
    %c0 = arith.constant 0 : index
    %c0_0 = arith.constant 0 : index
    %0 = vector.load %arg1[%c0, %c0_0] : memref<8x512xf32, #tpu.memory_space<vmem>>, vector<8x512xf32>
    %cst = arith.constant dense<0.000000e+00> : vector<8xf32>
    %1 = vector.multi_reduction <add>, %0, %cst [1] : vector<8x512xf32> to vector<8xf32>
    %2 = vector.shape_cast %1 : vector<8xf32> to vector<8x1xf32>
    %cst_1 = arith.constant 5.120000e+02 : f32
    %3 = vector.broadcast %cst_1 : f32 to vector<8x1xf32>
    %4 = arith.divf %2, %3 : vector<8x1xf32>
    %5 = vector.broadcast %4 : vector<8x1xf32> to vector<8x512xf32>
    %6 = arith.subf %0, %5 : vector<8x512xf32>
    %7 = arith.mulf %6, %6 : vector<8x512xf32>
    %cst_2 = arith.constant dense<0.000000e+00> : vector<8xf32>
    %8 = vector.multi_reduction <add>, %7, %cst_2 [1] : vector<8x512xf32> to vector<8xf32>
    %9 = vector.shape_cast %8 : vector<8xf32> to vector<8x1xf32>
    %cst_3 = arith.constant 5.120000e+02 : f32
    %10 = vector.broadcast %cst_3 : f32 to vector<8x1xf32>
    %11 = arith.divf %9, %10 : vector<8x1xf32>
    %cst_4 = arith.constant 9.99999974E-6 : f32
    %12 = vector.broadcast %cst_4 : f32 to vector<8x1xf32>
    %13 = arith.addf %11, %12 : vector<8x1xf32>
    %14 = math.rsqrt %13 : vector<8x1xf32>
    %15 = vector.broadcast %14 : vector<8x1xf32> to vector<8x512xf32>
    %16 = arith.mulf %6, %15 : vector<8x512xf32>
    %c0_5 = arith.constant 0 : index
    %c0_6 = arith.constant 0 : index
    %17 = vector.load %arg2[%c0_5, %c0_6] : memref<1x512xf32, #tpu.memory_space<vmem>>, vector<1x512xf32>
    %18 = vector.broadcast %17 : vector<1x512xf32> to vector<8x512xf32>
    %19 = arith.mulf %16, %18 : vector<8x512xf32>
    %c0_7 = arith.constant 0 : index
    %c0_8 = arith.constant 0 : index
    %20 = vector.load %arg3[%c0_7, %c0_8] : memref<1x512xf32, #tpu.memory_space<vmem>>, vector<1x512xf32>
    %21 = vector.broadcast %20 : vector<1x512xf32> to vector<8x512xf32>
    %22 = arith.addf %19, %21 : vector<8x512xf32>
    %c0_9 = arith.constant 0 : index
    %c0_10 = arith.constant 0 : index
    %23 = vector.load %arg4[%c0_9, %c0_10] : memref<8x512xf32, #tpu.memory_space<vmem>>, vector<8x512xf32>
    tpu.vector_store %arg4[%c0_9, %c0_10], %22 {strides = array<i32>} : memref<8x512xf32, #tpu.memory_space<vmem>>, vector<8x512xf32>,
    return
  }
  func.func @transform_0(%arg0: i32) -> (i32, i32) {
    %c0_i32 = arith.constant 0 : i32
    %c0_i32_0 = arith.constant 0 : i32
    return %arg0, %c0_i32 : i32, i32
  }
  func.func @transform_1(%arg0: i32) -> (i32, i32) {
    %c0_i32 = arith.constant 0 : i32
    %c0_i32_0 = arith.constant 0 : i32
    %c0_i32_1 = arith.constant 0 : i32
    return %c0_i32, %c0_i32_0 : i32, i32
  }
  func.func @transform_2(%arg0: i32) -> (i32, i32) {
    %c0_i32 = arith.constant 0 : i32
    %c0_i32_0 = arith.constant 0 : i32
    %c0_i32_1 = arith.constant 0 : i32
    return %c0_i32, %c0_i32_0 : i32, i32
  }
  func.func @transform_3(%arg0: i32) -> (i32, i32) {
    %c0_i32 = arith.constant 0 : i32
    %c0_i32_0 = arith.constant 0 : i32
    return %arg0, %c0_i32 : i32, i32
  }
}

</mosaic_0001>

<bundles_post_ra>
// kernel: tpu_custom_call.1
= control target key start
LH: loop header
LB: loop body
LE: loop exit
PB: predicated region body
PF: predicated region fallthrough
CT: control target
= control target key end

     0   :  { %8 = vsyncpa [#allocation3], 0  ;;  %s281_s0 = inlined_call_operand.hbm [shape: f32[8,512], index: 0, kind: input, shape index: {}]   ;;  %s282_s1 = inlined_call_operand.hbm [shape: f32[1,512], index: 1, kind: input, shape index: {}]   ;;  %s283_s2 = inlined_call_operand.vmem [shape: f32[1,512], index: 2, kind: input, shape index: {}]   ;;  %s284_s3 = inlined_call_operand.hbm [shape: f32[8,512], index: 3, kind: output, shape index: {}]  }
   0x1   :  { %9 = vsyncpa [#allocation6], 0 }
   0x2   :  { %10 = vsyncpa [#allocation4], 0  ;;  %s219_s12 = smov [#allocation2]   ;;  %s220_s14 = smov [#allocation5]  }
   0x3   :  { %s17_s13 = sshll.u32 %s219_s12, 4  ;;  %s27_s15 = sshll.u32 %s220_s14, 4  ;;  %s18_s13 = int_to_ptr.vmem [resolvable:$true] %s17_s13  ;;  %s28_s15 = int_to_ptr.vmem [resolvable:$true] %s27_s15 }
   0x4   :  { %s147_s18 = scalar_lea.hbm %s281_s0, 512 }
   0x5   :  { %p148_p0 = scmp.ne.s32.totalorder %s281_s0, %s147_s18  ;;  %p151_p1 = scmp.lt.u32.totalorder %s147_s18, %s281_s0 }
   0x7   :  { %p153_p2 = pnand %p151_p1, %p148_p0 }
   0x9   :  { %156 = shalt.err (!%p153_p2)
}
   0xa   :  { %s157_s23 = scalar_lea.vmem %s18_s13, 512  ;;  %p162_p4 = scmp.lt.s32.totalorder %s18_s13, %s18_s13 }
   0xb   :  { %p158_p3 = scmp.ne.s32.totalorder %s18_s13, %s157_s23  ;;  %p163_p5 = scmp.lt.s32.totalorder %s157_s23, %s157_s23 }
   0xd   :  { %p164_p6 = por %p163_p5, %p162_p4 }
   0xf   :  { %p165_p7 = pnand %p164_p6, %p158_p3 }
  0x11   :  { %168 = shalt.err (!%p165_p7)
}
  0x12   :  { %20 = dma.hbm_to_vmem [thread:$0]  %s281_s0, 512, %s18_s13, [#allocation3]  }
  0x13   :  { %s169_s28 = scalar_lea.hbm %s282_s1, 64 }
  0x14   :  { %p170_p8 = scmp.ne.s32.totalorder %s282_s1, %s169_s28  ;;  %p173_p9 = scmp.lt.u32.totalorder %s169_s28, %s282_s1 }
  0x16   :  { %p175_p10 = pnand %p173_p9, %p170_p8 }
  0x18   :  { %178 = shalt.err (!%p175_p10)
}
  0x19   :  { %s179_s6 = scalar_lea.vmem %s28_s15, 64  ;;  %p184_p12 = scmp.lt.s32.totalorder %s28_s15, %s28_s15 }
  0x1a   :  { %p180_p11 = scmp.ne.s32.totalorder %s28_s15, %s179_s6  ;;  %p185_p13 = scmp.lt.s32.totalorder %s179_s6, %s179_s6 }
  0x1c   :  { %p186_p0 = por %p185_p13, %p184_p12 }
  0x1e   :  { %p187_p1 = pnand %p186_p0, %p180_p11 }
  0x20   :  { %190 = shalt.err (!%p187_p1)
}
  0x21   :  { %30 = dma.hbm_to_vmem [thread:$0]  %s282_s1, 64, %s28_s15, [#allocation6]  }
  0x22   :  { %213 = dma.done.wait [#allocation3], 512  }
  0x23   :  { %214 = vsyncadd [#allocation3], 4294966784 }
  0x24   :  { %215 = dma.done.wait [#allocation6], 64  }
  0x25   :  { %216 = vsyncadd [#allocation6], 4294967232  ;;  %v39_v0 = vld [vmem:[#allocation2] sm:$0xff]  ;;  %v40_v1 = vld [vmem:[#allocation2 + $0x8] sm:$0xff]  ;;  %v72_v22 = vlaneseq  ;;  %s221_s9 = smov [#allocation7]  }
  0x26   :  { %v41_v2 = vld [vmem:[#allocation2 + $0x10] sm:$0xff]  ;;  %v43_v3 = vadd.f32 %v40_v1, %v39_v0  ;;  %v42_v4 = vld [vmem:[#allocation2 + $0x18] sm:$0xff]  ;;  %v70_v29 = vld [vmem:[#allocation5] sm:$0xf]  ;;  %s132_s10 = sshll.u32 %s221_s9, 4  ;;  %s133_s10 = int_to_ptr.vmem [resolvable:$true] %s132_s10 }
  0x27   :  { %v73_v24 = vshrl.u32 %v72_v22, 7  ;;  %v96_v30 = vld [vmem:[%s283_s2] sm:$0xf]  ;;  %s191_s2 = scalar_lea.vmem %s133_s10, 512  ;;  %p196_p3 = scmp.lt.s32.totalorder %s133_s10, %s133_s10 }
  0x28   :  { %v44_v5 = vadd.f32 %v43_v3, %v41_v2  ;;  %p192_p2 = scmp.ne.s32.totalorder %s133_s10, %s191_s2  ;;  %p197_p4 = scmp.lt.s32.totalorder %s191_s2, %s191_s2 }
  0x29   :  { %v74_v25 = vsub.s32 0, %v73_v24  ;;  %v78_v26 = vsub.s32 1, %v73_v24  ;;  %v82_v27 = vsub.s32 2, %v73_v24  ;;  %v86_v28 = vsub.s32 3, %v73_v24 }
  0x2a   :  { %v45_v6 = vadd.f32 %v44_v5, %v42_v4  ;;  %p198_p5 = por %p197_p4, %p196_p3 }
  0x2b   :  { %v75_v31 = vrot.slane %v70_v29, %v74_v25  ;;  %v79_v32 = vrot.slane %v70_v29, %v78_v26  ;;  %v83_v33 = vrot.slane %v70_v29, %v82_v27  ;;  %v87_v34 = vrot.slane %v70_v29, %v86_v28 }
  0x2c   :  { %46 = vadd.xlane.f32.xlu0 %v45_v6  ;;  %v101_v36 = vrot.slane %v96_v30, %v74_v25  ;;  %v105_v37 = vrot.slane %v96_v30, %v78_v26  ;;  %v109_v38 = vrot.slane %v96_v30, %v82_v27  ;;  %v113_v39 = vrot.slane %v96_v30, %v86_v28  ;;  %p199_p6 = pnand %p198_p5, %p192_p2 }
  0xb9   :  { %v47_v7 = vpop.xlane.xlu0 %46 }
  0xba   :  { %v49_v8 = vmul.f32 0.001953125, %v47_v7 }
  0xbc   :  { %v50_v9 = vsub.f32 %v39_v0, %v49_v8  ;;  %v51_v10 = vsub.f32 %v40_v1, %v49_v8  ;;  %v52_v11 = vsub.f32 %v41_v2, %v49_v8  ;;  %v53_v12 = vsub.f32 %v42_v4, %v49_v8 }
  0xbe   :  { %v54_v13 = vmul.f32 %v50_v9, %v50_v9  ;;  %v55_v14 = vmul.f32 %v51_v10, %v51_v10  ;;  %v56_v15 = vmul.f32 %v52_v11, %v52_v11  ;;  %v57_v17 = vmul.f32 %v53_v12, %v53_v12 }
  0xc0   :  { %v58_v16 = vadd.f32 %v55_v14, %v54_v13 }
  0xc2   :  { %v59_v18 = vadd.f32 %v58_v16, %v56_v15 }
  0xc4   :  { %v60_v19 = vadd.f32 %v59_v18, %v57_v17 }
  0xc6   :  { %61 = vadd.xlane.f32.xlu0 %v60_v19 }
 0x153   :  { %v62_v20 = vpop.xlane.xlu0 %61 }
 0x154   :  { %v63_v21 = vmul.f32 0.001953125, %v62_v20 }
 0x156   :  { %v64_v23 = vadd.f32 1e-05, %v63_v21 }
 0x158   :  { %145 = vrsqrt.f32 %v64_v23 }
 0x162   :  { %v146_v35 = vpop.eup %145 }
 0x163   :  { %v66_v40 = vmul.f32 %v146_v35, %v50_v9  ;;  %v67_v41 = vmul.f32 %v146_v35, %v51_v10  ;;  %v68_v42 = vmul.f32 %v146_v35, %v52_v11  ;;  %v69_v43 = vmul.f32 %v146_v35, %v53_v12 }
 0x165   :  { %v92_v44 = vmul.f32 %v75_v31, %v66_v40  ;;  %v93_v45 = vmul.f32 %v79_v32, %v67_v41  ;;  %v94_v46 = vmul.f32 %v83_v33, %v68_v42  ;;  %v95_v47 = vmul.f32 %v87_v34, %v69_v43 }
 0x167   :  { %v118_v48 = vadd.f32 %v101_v36, %v92_v44  ;;  %v119_v49 = vadd.f32 %v105_v37, %v93_v45  ;;  %v120_v50 = vadd.f32 %v109_v38, %v94_v46  ;;  %v121_v51 = vadd.f32 %v113_v39, %v95_v47 }
 0x169   :  { %122 = vst [vmem:[#allocation7] sm:$0xff] %v118_v48  ;;  %123 = vst [vmem:[#allocation7 + $0x8] sm:$0xff] %v119_v49 }
 0x16a   :  { %124 = vst [vmem:[#allocation7 + $0x10] sm:$0xff] %v120_v50  ;;  %125 = vst [vmem:[#allocation7 + $0x18] sm:$0xff] %v121_v51 }
 0x16b   :  { %202 = shalt.err (!%p199_p6)
}
 0x16c   :  { %s203_s13 = scalar_lea.hbm %s284_s3, 512 }
 0x16d   :  { %p204_p7 = scmp.ne.s32.totalorder %s284_s3, %s203_s13  ;;  %p207_p8 = scmp.lt.u32.totalorder %s203_s13, %s284_s3 }
 0x16f   :  { %p209_p9 = pnand %p207_p8, %p204_p7 }
 0x171   :  { %212 = shalt.err (!%p209_p9)
}
 0x172   :  { %135 = dma.vmem_to_hbm [thread:$0]  %s133_s10, 512, %s284_s3, [#allocation4]  }
 0x173   :  { %217 = dma.done.wait [#allocation4], 512  }
 0x174   :  { %218 = vsyncadd [#allocation4], 4294966784 }
 0x175   :  { %139 = vsyncpa [#allocation3], 1 }
 0x176   :  { %140 = vsyncpa [#allocation6], 1 }
 0x177   :  { %141 = vsyncpa [#allocation4], 1 }

</bundles_post_ra>
